<compile_context>
chip_gen: v5e
topology: v5e:2x2
jax: 0.10.0
libtpu: 0.0.40
codegen_flags: <defaults>
</compile_context>

<pallas_src>
import jax
import jax.numpy as jnp
from jax.experimental import pallas as pl
from jax.experimental.pallas import tpu as pltpu

BN_EPS = 1e-5
_X_RESIDENT_BYTES = 8 << 20   # keep x fully VMEM-resident below this size


def _round_up(x, m):
    return (x + m - 1) // m * m


def _pad_to(arr, axis, size):
    pad = size - arr.shape[axis]
    if pad == 0:
        return arr
    widths = [(0, 0)] * arr.ndim
    widths[axis] = (0, pad)
    return jnp.pad(arr, widths)


def _vmem_capacity_bytes():
    try:
        cap = getattr(pltpu.get_tpu_info(), "vmem_capacity_bytes", None)
        if cap:
            return int(cap)
    except Exception:
        pass
    return 64 << 20   # conservative: assume v7x-sized (64 MiB) VMEM


def _make_kernel(x_full, tk, n_k, compute_dtype):
    def kernel(x_ref, w_ref, gamma_ref, beta_ref, out_ref):
        k = pl.program_id(1)

        @pl.when(k == 0)
        def _():
            out_ref[...] = jnp.zeros_like(out_ref)

        if x_full and n_k > 1:
            start = pl.multiple_of(k * tk, tk)
            xk = x_ref[:, pl.ds(start, tk)]
        else:
            xk = x_ref[...]

        # Linear (fc bias cancels under the batch-mean subtraction).  f32
        # accumulation goes straight into the resident output block.
        out_ref[...] += jnp.dot(
            xk.astype(compute_dtype), w_ref[...],
            preferred_element_type=jnp.float32)

        @pl.when(k == n_k - 1)
        def _():
            y = out_ref[...]                                   # [B, TN] f32
            inv_n = 1.0 / y.shape[0]
            mean = jnp.sum(y, axis=0, keepdims=True) * inv_n
            centered = y - mean
            var = jnp.sum(centered * centered, axis=0, keepdims=True) * inv_n
            inv_std = jax.lax.rsqrt(var + BN_EPS)
            scale = gamma_ref[...] * inv_std                   # [1, TN]
            out_ref[...] = (centered * scale + beta_ref[...]).astype(out_ref.dtype)

    return kernel


def _derive_tiling(B, in_dim, hidden, tile_n, tile_k, w_elt, tile_budget):
    tn = min(_round_up(tile_n, 128), _round_up(hidden, 128))
    tk = in_dim if in_dim <= tile_k else tile_k

    def need(tn_, tk_, x_full_):
        kp_ = _round_up(in_dim, tk_)
        xk = kp_ if x_full_ else tk_
        return (2 * B * xk * 4            # x blocks (f32, double-buffered)
                + 2 * tk_ * tn_ * w_elt   # W blocks (double-buffered)
                + 2 * B * tn_ * 4         # out blocks (also the accumulator)
                + 32 * tn_)               # gamma / beta

    x_full = B * _round_up(in_dim, tk) * 4 <= _X_RESIDENT_BYTES
    while need(tn, tk, x_full) > tile_budget:
        if x_full and need(tn, tk, False) <= tile_budget:
            x_full = False
        elif tn > 128:
            tn = max(128, _round_up(tn // 2, 128))
        elif tk > 256 and tk % 256 == 0:
            tk //= 2
        else:
            # TODO(synk): tile the batch dim (partial s1/s2 + a light second
            # normalization pass) for batches too large for single-pass BN
            # within v7x's 64 MiB VMEM.
            break

    kp = _round_up(in_dim, tk)
    hp = _round_up(hidden, tn)
    return tn, tk, hp, kp, x_full, need(tn, tk, x_full)


def prepare_params(w, gamma, beta, *, kp, hp, compute_dtype):
    """One-time pad + cast of the weights.

    Hoisted out of the per-call path; cache the result across calls in
    production so W is never re-materialized in HBM per forward pass.
    """
    wp = _pad_to(_pad_to(w, 0, kp), 1, hp).astype(compute_dtype)
    gp = _pad_to(gamma.reshape(1, -1).astype(jnp.float32), 1, hp)
    bp = _pad_to(beta.reshape(1, -1).astype(jnp.float32), 1, hp)
    return wp, gp, bp


def linear_backend(x, w, b, gamma, beta, *, tile_n=512, tile_k=1024,
                   compute_dtype=jnp.bfloat16):
    """Forward of LinearBackend: BatchNorm1d(Linear(x)), training-mode BN.

    x: [B, in_dim]; w: [in_dim, hidden] (pre-transposed fc weight);
    b/gamma/beta: [hidden] or [1, hidden].  `b` is mathematically cancelled
    by the batch-mean subtraction, so it is never read.
    """
    del b
    assert x.ndim == 2, f"Input size error in pooling. Need 2, but get {x.ndim}"
    B, in_dim = x.shape
    hidden = w.shape[1]
    w_elt = jnp.dtype(compute_dtype).itemsize

    # Generation-aware VMEM budgeting (v7x: 64 MiB physical; v5e/v6e: 128 MiB).
    vmem_cap = _vmem_capacity_bytes()
    cap_limit = (vmem_cap * 3) // 4            # headroom for compiler scratch
    tile_budget = cap_limit - (6 << 20)

    tn, tk, hp, kp, x_full, vmem_need = _derive_tiling(
        B, in_dim, hidden, tile_n, tile_k, w_elt, tile_budget)

    xp = _pad_to(x, 1, kp)                     # stays f32; cast happens in-kernel
    wp, gp, bp = prepare_params(w, gamma, beta, kp=kp, hp=hp,
                                compute_dtype=compute_dtype)

    n_j, n_k = hp // tn, kp // tk
    x_reads = 1 if x_full else n_j

    cost = pl.CostEstimate(
        flops=2 * B * kp * hp + 10 * B * hp,
        transcendentals=hp,
        bytes_accessed=(x_reads * B * kp * x.dtype.itemsize
                        + kp * hp * w_elt + 2 * hp * 4 + B * hp * 4),
    )

    if x_full:
        x_spec = pl.BlockSpec((B, kp), lambda j, k: (0, 0))   # DMA'd once, resident
    else:
        x_spec = pl.BlockSpec((B, tk), lambda j, k: (0, k))

    vmem_limit = int(min(max(vmem_need + (4 << 20), 16 << 20), cap_limit))

    out_padded = pl.pallas_call(
        _make_kernel(x_full, tk, n_k, compute_dtype),
        out_shape=jax.ShapeDtypeStruct((B, hp), jnp.float32),
        grid_spec=pltpu.PrefetchScalarGridSpec(
            num_scalar_prefetch=0,
            grid=(n_j, n_k),
            in_specs=[
                x_spec,                                        # x
                pl.BlockSpec((tk, tn), lambda j, k: (k, j)),   # W
                pl.BlockSpec((1, tn), lambda j, k: (0, j)),    # gamma
                pl.BlockSpec((1, tn), lambda j, k: (0, j)),    # beta
            ],
            out_specs=pl.BlockSpec((B, tn), lambda j, k: (0, j)),
        ),
        compiler_params=pltpu.CompilerParams(
            dimension_semantics=("parallel", "arbitrary"),
            vmem_limit_bytes=vmem_limit,
        ),
        cost_estimate=cost,
    )(xp, wp, gp, bp)

    return out_padded[:, :hidden]


def reference(x, w, b, gamma, beta):
    y = x @ w + b
    mean = y.mean(axis=0, keepdims=True)
    var = ((y - mean) ** 2).mean(axis=0, keepdims=True)
    return (y - mean) / jnp.sqrt(var + BN_EPS) * gamma + beta


if __name__ == "__main__":
    key = jax.random.PRNGKey(0)
    B, in_dim, hidden_dim = 8, 32, 64

    kx, kw, kb = jax.random.split(key, 3)
    x = jax.random.normal(kx, (B, in_dim), dtype=jnp.float32)

    # Deterministic param init (Linear: U(-1/sqrt(in), 1/sqrt(in)); BN: gamma=1, beta=0).
    bound = 1.0 / jnp.sqrt(jnp.float32(in_dim))
    w = jax.random.uniform(kw, (in_dim, hidden_dim), jnp.float32, -bound, bound)
    b = jax.random.uniform(kb, (1, hidden_dim), jnp.float32, -bound, bound)
    gamma = jnp.ones((1, hidden_dim), jnp.float32)
    beta = jnp.zeros((1, hidden_dim), jnp.float32)

    ref = reference(x, w, b, gamma, beta)

    # f32 compute path: tight check against the PyTorch-semantics reference.
    out_f32 = jax.block_until_ready(
        linear_backend(x, w, b, gamma, beta, compute_dtype=jnp.float32))
    assert out_f32.shape == (B, hidden_dim)
    assert jnp.allclose(out_f32, ref, atol=5e-4, rtol=5e-4)

    # Default bf16-operand MXU path: looser tolerance (bf16 y also feeds the
    # batch statistics, so mean/var carry bf16 rounding).
    out_bf16 = jax.block_until_ready(linear_backend(x, w, b, gamma, beta))
    assert out_bf16.shape == (B, hidden_dim)
    assert jnp.allclose(out_bf16, ref, atol=5e-2, rtol=5e-2)

    print("KERNEL_OK")
</pallas_src>

<mosaic_0001>
module attributes {stable_mosaic.version = 11 : i64} {
  func.func @kernel(%arg0: i32, %arg1: i32, %arg2: memref<8x32xf32, #tpu.memory_space<vmem>>, %arg3: memref<32x128xf32, #tpu.memory_space<vmem>>, %arg4: memref<1x128xf32, #tpu.memory_space<vmem>>, %arg5: memref<1x128xf32, #tpu.memory_space<vmem>>, %arg6: memref<8x128xf32, #tpu.memory_space<vmem>>) attributes {dimension_semantics = [#tpu.dimension_semantics<parallel>, #tpu.dimension_semantics<arbitrary>], iteration_bounds = array<i64: 1, 1>, scalar_prefetch = 0 : i64, scratch_operands = 0 : i64, tpu.core_type = #tpu.core_type<tc>, window_params = [{pipeline_mode = #tpu.pipeline_mode<synchronous>, transform_indices = @transform_0, window_bounds = array<i64: 8, 32>}, {transform_indices = @transform_1, window_bounds = array<i64: 32, 128>}, {transform_indices = @transform_2, window_bounds = array<i64: 1, 128>}, {transform_indices = @transform_3, window_bounds = array<i64: 1, 128>}, {transform_indices = @transform_4, window_bounds = array<i64: 8, 128>}]} {
    %c0_i32 = arith.constant 0 : i32
    %0 = arith.cmpi eq, %arg1, %c0_i32 : i32
    %1 = arith.extui %0 : i1 to i32
    %c0_i32_0 = arith.constant 0 : i32
    %2 = arith.cmpi ne, %1, %c0_i32_0 : i32
    scf.if %2 {
      %cst_10 = arith.constant 0.000000e+00 : f32
      %12 = vector.broadcast %cst_10 : f32 to vector<8x128xf32>
      %c0_11 = arith.constant 0 : index
      %c0_12 = arith.constant 0 : index
      %13 = vector.load %arg6[%c0_11, %c0_12] : memref<8x128xf32, #tpu.memory_space<vmem>>, vector<8x128xf32>
      tpu.vector_store %arg6[%c0_11, %c0_12], %12 {strides = array<i32>} : memref<8x128xf32, #tpu.memory_space<vmem>>, vector<8x128xf32>,
    } else {
    }
    %c0 = arith.constant 0 : index
    %c0_1 = arith.constant 0 : index
    %3 = vector.load %arg2[%c0, %c0_1] : memref<8x32xf32, #tpu.memory_space<vmem>>, vector<8x32xf32>
    %c0_2 = arith.constant 0 : index
    %c0_3 = arith.constant 0 : index
    %4 = vector.load %arg6[%c0_2, %c0_3] : memref<8x128xf32, #tpu.memory_space<vmem>>, vector<8x128xf32>
    %c0_4 = arith.constant 0 : index
    %c0_5 = arith.constant 0 : index
    %5 = vector.load %arg3[%c0_4, %c0_5] : memref<32x128xf32, #tpu.memory_space<vmem>>, vector<32x128xf32>
    %cst = arith.constant dense<0.000000e+00> : vector<8x128xf32>
    %6 = tpu.matmul %3, %5, %cst {dimension_numbers = #tpu.dot_dimension_numbers<[1], [0], [0], [1], [0, 0, 1, 1], [], []>} : vector<8x32xf32>, vector<32x128xf32>, vector<8x128xf32> -> vector<8x128xf32>
    %7 = arith.addf %4, %6 : vector<8x128xf32>
    %c0_6 = arith.constant 0 : index
    %c0_7 = arith.constant 0 : index
    %8 = vector.load %arg6[%c0_6, %c0_7] : memref<8x128xf32, #tpu.memory_space<vmem>>, vector<8x128xf32>
    tpu.vector_store %arg6[%c0_6, %c0_7], %7 {strides = array<i32>} : memref<8x128xf32, #tpu.memory_space<vmem>>, vector<8x128xf32>,
    %c0_i32_8 = arith.constant 0 : i32
    %9 = arith.cmpi eq, %arg1, %c0_i32_8 : i32
    %10 = arith.extui %9 : i1 to i32
    %c0_i32_9 = arith.constant 0 : i32
    %11 = arith.cmpi ne, %10, %c0_i32_9 : i32
    scf.if %11 {
      %c0_10 = arith.constant 0 : index
      %c0_11 = arith.constant 0 : index
      %12 = vector.load %arg6[%c0_10, %c0_11] : memref<8x128xf32, #tpu.memory_space<vmem>>, vector<8x128xf32>
      %cst_12 = arith.constant dense<0.000000e+00> : vector<128xf32>
      %13 = vector.multi_reduction <add>, %12, %cst_12 [0] : vector<8x128xf32> to vector<128xf32>
      %14 = vector.shape_cast %13 : vector<128xf32> to vector<1x128xf32>
      %cst_13 = arith.constant 1.250000e-01 : f32
      %15 = vector.broadcast %cst_13 : f32 to vector<1x128xf32>
      %16 = arith.mulf %14, %15 : vector<1x128xf32>
      %17 = vector.broadcast %16 : vector<1x128xf32> to vector<8x128xf32>
      %18 = arith.subf %12, %17 : vector<8x128xf32>
      %19 = arith.mulf %18, %18 : vector<8x128xf32>
      %cst_14 = arith.constant dense<0.000000e+00> : vector<128xf32>
      %20 = vector.multi_reduction <add>, %19, %cst_14 [0] : vector<8x128xf32> to vector<128xf32>
      %21 = vector.shape_cast %20 : vector<128xf32> to vector<1x128xf32>
      %cst_15 = arith.constant 1.250000e-01 : f32
      %22 = vector.broadcast %cst_15 : f32 to vector<1x128xf32>
      %23 = arith.mulf %21, %22 : vector<1x128xf32>
      %cst_16 = arith.constant 9.99999974E-6 : f32
      %24 = vector.broadcast %cst_16 : f32 to vector<1x128xf32>
      %25 = arith.addf %23, %24 : vector<1x128xf32>
      %26 = math.rsqrt %25 : vector<1x128xf32>
      %c0_17 = arith.constant 0 : index
      %c0_18 = arith.constant 0 : index
      %27 = vector.load %arg4[%c0_17, %c0_18] : memref<1x128xf32, #tpu.memory_space<vmem>>, vector<1x128xf32>
      %28 = arith.mulf %27, %26 : vector<1x128xf32>
      %29 = vector.broadcast %28 : vector<1x128xf32> to vector<8x128xf32>
      %30 = arith.mulf %18, %29 : vector<8x128xf32>
      %c0_19 = arith.constant 0 : index
      %c0_20 = arith.constant 0 : index
      %31 = vector.load %arg5[%c0_19, %c0_20] : memref<1x128xf32, #tpu.memory_space<vmem>>, vector<1x128xf32>
      %32 = vector.broadcast %31 : vector<1x128xf32> to vector<8x128xf32>
      %33 = arith.addf %30, %32 : vector<8x128xf32>
      %c0_21 = arith.constant 0 : index
      %c0_22 = arith.constant 0 : index
      %34 = vector.load %arg6[%c0_21, %c0_22] : memref<8x128xf32, #tpu.memory_space<vmem>>, vector<8x128xf32>
      tpu.vector_store %arg6[%c0_21, %c0_22], %33 {strides = array<i32>} : memref<8x128xf32, #tpu.memory_space<vmem>>, vector<8x128xf32>,
    } else {
    }
    return
  }
  func.func @transform_0(%arg0: i32, %arg1: i32) -> (i32, i32) {
    %c0_i32 = arith.constant 0 : i32
    %c0_i32_0 = arith.constant 0 : i32
    %c0_i32_1 = arith.constant 0 : i32
    return %c0_i32, %c0_i32_0 : i32, i32
  }
  func.func @transform_1(%arg0: i32, %arg1: i32) -> (i32, i32) {
    %c0_i32 = arith.constant 0 : i32
    return %arg1, %arg0 : i32, i32
  }
  func.func @transform_2(%arg0: i32, %arg1: i32) -> (i32, i32) {
    %c0_i32 = arith.constant 0 : i32
    %c0_i32_0 = arith.constant 0 : i32
    return %c0_i32, %arg0 : i32, i32
  }
  func.func @transform_3(%arg0: i32, %arg1: i32) -> (i32, i32) {
    %c0_i32 = arith.constant 0 : i32
    %c0_i32_0 = arith.constant 0 : i32
    return %c0_i32, %arg0 : i32, i32
  }
  func.func @transform_4(%arg0: i32, %arg1: i32) -> (i32, i32) {
    %c0_i32 = arith.constant 0 : i32
    %c0_i32_0 = arith.constant 0 : i32
    return %c0_i32, %arg0 : i32, i32
  }
}

</mosaic_0001>

<bundles_post_ra>
// kernel: tpu_custom_call.1
= control target key start
LH: loop header
LB: loop body
LE: loop exit
PB: predicated region body
PF: predicated region fallthrough
CT: control target
= control target key end

     0   :  { %9 = vsyncpa [#allocation3], 0  ;;  %s279_s0 = inlined_call_operand.hbm [shape: f32[8,32], index: 0, kind: input, shape index: {}]   ;;  %s280_s1 = inlined_call_operand.hbm [shape: f32[32,128], index: 1, kind: input, shape index: {}]   ;;  %s281_s2 = inlined_call_operand.vmem [shape: f32[1,128], index: 2, kind: input, shape index: {}]   ;;  %s282_s3 = inlined_call_operand.vmem [shape: f32[1,128], index: 3, kind: input, shape index: {}]   ;;  %s283_s4 = inlined_call_operand.hbm [shape: f32[8,128], index: 4, kind: output, shape index: {}]  }
   0x1   :  { %10 = vsyncpa [#allocation6], 0 }
   0x2   :  { %11 = vsyncpa [#allocation4], 0  ;;  %s17_s17 = sshll.u32 %s279_s0, 4  ;;  %s234_s18 = smov [#allocation2]   ;;  %s18_s17 = int_to_ptr.hbm [resolvable:$true] %s17_s17 }
   0x3   :  { %s19_s19 = sshll.u32 %s234_s18, 4  ;;  %s27_s22 = sshll.u32 %s280_s1, 4  ;;  %s20_s19 = int_to_ptr.vmem [resolvable:$true] %s19_s19  ;;  %s28_s22 = int_to_ptr.hbm [resolvable:$true] %s27_s22 }
   0x4   :  { %22 = dma.hbm_to_vmem [thread:$0]  %s18_s17, 128, %s20_s19, [#allocation3]  }
   0x5   :  { %s235_s23 = smov [#allocation5]   ;;  %s236_s25 = smov 128  }
   0x6   :  { %s29_s24 = sshll.u32 %s235_s23, 4  ;;  %s237_s26 = smov 8   ;;  %s30_s24 = int_to_ptr.vmem [resolvable:$true] %s29_s24 }
   0x7   :  { %35 = dma.hbm_to_vmem [thread:$0]  %s28_s22, 512, %s30_s24, [#allocation6], %s236_s25, %s236_s25, %s237_s26  }
   0x8   :  { %228 = dma.done.wait [#allocation3], 128  }
   0x9   :  { %229 = vsyncadd [#allocation3], 4294967168 }
   0xa   :  { %230 = dma.done.wait [#allocation6], 512  }
   0xb   :  { %231 = vsyncadd [#allocation6], 4294966784  ;;  %v58_v0 = vld [vmem:[#allocation5 + $0x18] sm:$0xff]  ;;  %v57_v1 = vld [vmem:[#allocation5 + $0x10] sm:$0xff]  ;;  %vm59_vm0 = vcmask 261120   ;;  %s238_s29 = smov [#allocation7]  }
   0xc   :  { %75 = vmatpush.msra.mxu0 %v58_v0  ;;  %v56_v2 = vld [vmem:[#allocation5 + $0x8] sm:$0xff]  ;;  %v55_v3 = vld [vmem:[#allocation5] sm:$0xff]  ;;  %v53_v4 = vld [vmem:[#allocation2] sm:$0xff]  ;;  %s133_s30 = sshll.u32 %s238_s29, 4  ;;  %s135_s7 = sshll.u32 %s283_s4, 4  ;;  %s134_s30 = int_to_ptr.vmem [resolvable:$true] %s133_s30  ;;  %s136_s7 = int_to_ptr.hbm [resolvable:$true] %s135_s7 }
   0xd   :  { %v116_v29 = vld [vmem:[%s281_s2] sm:$0x1] }
   0xe   :  { %76 = vmatpush.msra.mxu0 %v57_v1  ;;  %v153_v33 = vld [vmem:[%s282_s3] ss:$0 sm:$0xff] }
  0x10   :  { %77 = vmatpush.msra.mxu0 %v56_v2 }
  0x12   :  { %78 = vmatpush.msra.mxu0 %v55_v3 }
  0x13   :  { %146 = vmatmul.msk.f32.vlgmr.msra.gmra.mxu0 %vm59_vm0, %v53_v4 }
  0x90   :  { %v80_v5 = vpop.f32.mrf.mxu0 }
  0x91   :  { %v89_v6 = vrot.slane %v80_v5, 4 }
  0x93   :  { %v90_v7 = vadd.f32 %v89_v6, %v80_v5 }
  0x95   :  { %v91_v8 = vrot.slane %v90_v7, 2 }
  0x97   :  { %v92_v9 = vadd.f32 %v91_v8, %v90_v7 }
  0x99   :  { %v93_v10 = vrot.slane %v92_v9, 1 }
  0x9b   :  { %v94_v11 = vadd.f32 %v93_v10, %v92_v9 }
  0x9d   :  { %v95_v12 = vmul.f32 0.125, %v94_v11 }
  0x9f   :  { %v96_v13 = vsub.f32 %v80_v5, %v95_v12 }
  0xa1   :  { %v97_v14 = vmul.f32 %v96_v13, %v96_v13 }
  0xa3   :  { %v98_v15 = vrot.slane %v97_v14, 4 }
  0xa5   :  { %v99_v16 = vadd.f32 %v98_v15, %v97_v14 }
  0xa7   :  { %v100_v17 = vrot.slane %v99_v16, 2 }
  0xa9   :  { %v101_v18 = vadd.f32 %v100_v17, %v99_v16 }
  0xab   :  { %v102_v19 = vrot.slane %v101_v18, 1 }
  0xad   :  { %v103_v20 = vadd.f32 %v102_v19, %v101_v18 }
  0xaf   :  { %v104_v21 = vmul.f32 0.125, %v103_v20 }
  0xb1   :  { %v105_v22 = vadd.f32 1e-05, %v104_v21 }
  0xb3   :  { %154 = vrsqrt.f32 %v105_v22  ;;  %vm112_vm2 = vweird.f32 %v105_v22 }
  0xb9   :  { %v155_v23 = vpop.eup %154 }
  0xba   :  { %v107_v24 = vmul.f32 %v155_v23, %v105_v22  ;;  %vm113_vm1 = vweird.f32 %v155_v23 }
  0xbb   :  { %vm114_vm3 = vmor %vm112_vm2, %vm113_vm1 }
  0xbc   :  { %v108_v25 = vmul.f32 %v155_v23, %v107_v24 }
  0xbe   :  { %v109_v26 = vmul.f32 0.5, %v108_v25 }
  0xc0   :  { %v110_v27 = vsub.f32 1.5, %v109_v26 }
  0xc2   :  { %v111_v28 = vmul.f32 %v155_v23, %v110_v27 }
  0xc4   :  { %v115_v30 = vsel %vm114_vm3, %v155_v23, %v111_v28 }
  0xc5   :  { %v117_v31 = vmul.f32 %v116_v29, %v115_v30 }
  0xc7   :  { %v119_v32 = vperm.slane %v117_v31, 0 }
  0xc9   :  { %v121_v34 = vmul.f32 %v119_v32, %v96_v13 }
  0xcb   :  { %v126_v35 = vadd.f32 %v153_v33, %v121_v34 }
  0xcd   :  { %127 = vst [vmem:[#allocation7] sm:$0xff] %v126_v35 }
  0xce   :  { %138 = dma.vmem_to_hbm [thread:$0]  %s134_s30, 128, %s136_s7, [#allocation4]  }
  0xcf   :  { %232 = dma.done.wait [#allocation4], 128  }
  0xd0   :  { %233 = vsyncadd [#allocation4], 4294967168 }
  0xd1   :  { %143 = vsyncpa [#allocation3], 1 }
  0xd2   :  { %144 = vsyncpa [#allocation6], 1 }
  0xd3   :  { %145 = vsyncpa [#allocation4], 1 }

</bundles_post_ra>
